<compile_context>
chip_gen: v5e
topology: v5e:2x2
jax: 0.10.0
libtpu: 0.0.40
codegen_flags: <defaults>
</compile_context>

<pallas_src>
import jax
import jax.numpy as jnp
from jax.experimental import pallas as pl
from jax.experimental.pallas import tpu as pltpu


def _actor_critic_kernel(xa_ref, w1_ref, wh_ref, bh_ref, u_ref, out_ref):
    """Fused actor-critic forward, batch on lanes.

    xa_ref : (8, TB)   rows 0..3 = features (transposed), row 4 = 1.0 (bias)
    w1_ref : (128, 8)  cols 0..3 = fc1 weight, col 4 = fc1 bias
    wh_ref : (2, 128)  row 0 = pfc2[1]-pfc2[0] (logit diff), row 1 = vfc2
    bh_ref : (2, 1)    fused head bias [b2[1]-b2[0]; bv]
    u_ref  : (1, TB)   uniforms for inverse-CDF sampling
    out_ref: (4, TB)   rows = action, log_prob, entropy, value
    """
    # fc1 (+ bias via ones-row) + ReLU on the MXU; batch lives on lanes.
    core = jnp.maximum(
        jnp.dot(w1_ref[...], xa_ref[...], preferred_element_type=jnp.float32),
        0.0)                                                         # (128, TB)

    # Fused policy/value head: rows = [d = logit1 - logit0, value].
    h = jnp.dot(wh_ref[...], core,
                preferred_element_type=jnp.float32) + bh_ref[...]    # (2, TB)
    d = h[0:1, :]
    value = h[1:2, :]

    # Binary softmax quantities from d alone (stable softplus).
    sp = jnp.maximum(d, 0.0) + jnp.log1p(jnp.exp(-jnp.abs(d)))       # softplus(d)
    p1 = jnp.exp(d - sp)                                             # sigmoid(d)
    entropy = sp - p1 * d

    # Inverse-CDF Bernoulli sample (same distribution as Categorical.sample()).
    pick1 = u_ref[...] < p1
    action_f = pick1.astype(jnp.float32)
    log_prob = action_f * d - sp                                     # logp of action

    out_ref[0:1, :] = action_f
    out_ref[1:2, :] = log_prob
    out_ref[2:3, :] = entropy
    out_ref[3:4, :] = value


def _pick_tile_lanes(batch):
    """Tile width (lanes): multiple of 128, grid >= 2 when B > 128, cap 2048."""
    groups = pl.cdiv(batch, 128)
    if groups <= 1:
        return 128
    groups = min(-(-groups // 2), 16)   # split >=2 ways (v7x megacore), TB<=2048
    return 128 * groups


def cartpole_actor_critic_forward(x, params, key):
    """Full forward pass in one Pallas call.

    Returns (action (B,) int32, log_prob (B,), entropy (B,), value (B, 1)),
    matching the PyTorch module's forward semantics (the sample matches
    Categorical(logits).sample() in distribution, not bitwise).
    """
    B = x.shape[0]
    w1, b1, w2, b2, wv, bv = params       # PyTorch (out_features, in_features)

    TB = _pick_tile_lanes(B)
    Bp = TB * pl.cdiv(B, TB)
    grid = (Bp // TB,)

    # Transposed, K-padded input with the fc1 bias folded in as a ones-row.
    xa = jnp.zeros((8, Bp), jnp.float32)
    xa = xa.at[0:4, :B].set(x.T.astype(jnp.float32))
    xa = xa.at[4, :B].set(1.0)

    w1a = jnp.zeros((128, 8), jnp.float32)
    w1a = w1a.at[:, 0:4].set(w1)
    w1a = w1a.at[:, 4].set(b1)

    wh = jnp.concatenate([w2[1:2, :] - w2[0:1, :], wv], axis=0)      # (2, 128)
    bh = jnp.stack([b2[1] - b2[0], bv[0]])[:, None]                  # (2, 1)

    # Host-side uniforms (portable; no in-kernel PRNG primitives needed).
    u = jax.random.uniform(key, (1, Bp), jnp.float32)

    out = pl.pallas_call(
        _actor_critic_kernel,
        out_shape=jax.ShapeDtypeStruct((4, Bp), jnp.float32),
        grid_spec=pltpu.PrefetchScalarGridSpec(
            num_scalar_prefetch=0,
            grid=grid,
            in_specs=[
                pl.BlockSpec((8, TB), lambda i: (0, i)),     # xa (batch tiles)
                pl.BlockSpec((128, 8), lambda i: (0, 0)),    # w1a (resident)
                pl.BlockSpec((2, 128), lambda i: (0, 0)),    # wh  (resident)
                pl.BlockSpec((2, 1), lambda i: (0, 0)),      # bh  (resident)
                pl.BlockSpec((1, TB), lambda i: (0, i)),     # uniforms
            ],
            out_specs=pl.BlockSpec((4, TB), lambda i: (0, i)),
        ),
        compiler_params=pltpu.CompilerParams(
            dimension_semantics=("parallel",)),
    )(xa, w1a, wh, bh, u)

    action = out[0, :B].astype(jnp.int32)   # PyTorch returns int64; int32 here
    log_prob = out[1, :B]
    entropy = out[2, :B]
    value = out[3, :B][:, None]
    return action, log_prob, entropy, value


def init_params(key):
    """Deterministic parameter init, PyTorch nn.Linear shapes/convention."""
    k1, k2, k3, k4, k5, k6 = jax.random.split(key, 6)
    lim1 = (1.0 / 4) ** 0.5
    lim2 = (1.0 / 128) ** 0.5
    w1 = jax.random.uniform(k1, (128, 4), jnp.float32, -lim1, lim1)
    b1 = jax.random.uniform(k2, (128,), jnp.float32, -lim1, lim1)
    w2 = jax.random.uniform(k3, (2, 128), jnp.float32, -lim2, lim2)
    b2 = jax.random.uniform(k4, (2,), jnp.float32, -lim2, lim2)
    wv = jax.random.uniform(k5, (1, 128), jnp.float32, -lim2, lim2)
    bv = jax.random.uniform(k6, (1,), jnp.float32, -lim2, lim2)
    return (w1, b1, w2, b2, wv, bv)


if __name__ == "__main__":
    root = jax.random.PRNGKey(0)
    pkey, xkey = jax.random.split(root, 2)
    params = init_params(pkey)
    w1, b1, w2, b2, wv, bv = params

    def reference(x):
        core = jnp.maximum(x @ w1.T + b1, 0.0)
        logits = core @ w2.T + b2
        m = jnp.max(logits, axis=-1, keepdims=True)
        lse = m + jnp.log(jnp.sum(jnp.exp(logits - m), axis=-1, keepdims=True))
        lp = logits - lse
        p = jnp.exp(lp)
        ent = -jnp.sum(p * lp, axis=-1)
        val = core @ wv.T + bv
        return lp, ent, val

    # Small demo batch plus a ragged batch that exercises padding and grid>=2.
    for case_idx, B in enumerate((8, 300)):
        xk, sk = jax.random.split(jax.random.fold_in(xkey, case_idx))
        x = jax.random.normal(xk, (B, 4), dtype=jnp.float32)

        action, log_prob, entropy, value = cartpole_actor_critic_forward(
            x, params, sk)
        jax.block_until_ready((action, log_prob, entropy, value))

        assert action.shape == (B,) and action.dtype == jnp.int32
        assert log_prob.shape == (B,)
        assert entropy.shape == (B,)
        assert value.shape == (B, 1)
        assert bool(jnp.all((action == 0) | (action == 1)))

        lp_ref, ent_ref, val_ref = reference(x)
        assert jnp.allclose(entropy, ent_ref, rtol=1e-4, atol=1e-4)
        assert jnp.allclose(value, val_ref, rtol=1e-4, atol=1e-4)
        lp_sel = jnp.take_along_axis(lp_ref, action[:, None], axis=1)[:, 0]
        assert jnp.allclose(log_prob, lp_sel, rtol=1e-4, atol=1e-4)
        assert bool(jnp.all(log_prob <= 1e-6))
        assert bool(jnp.all(entropy >= -1e-6)) and bool(
            jnp.all(entropy <= jnp.log(2.0) + 1e-5))

    print("KERNEL_OK")
</pallas_src>

<mosaic_0001>
module attributes {stable_mosaic.version = 11 : i64} {
  func.func @_actor_critic_kernel(%arg0: i32, %arg1: memref<8x128xf32, #tpu.memory_space<vmem>>, %arg2: memref<128x8xf32, #tpu.memory_space<vmem>>, %arg3: memref<2x128xf32, #tpu.memory_space<vmem>>, %arg4: memref<2x1xf32, #tpu.memory_space<vmem>>, %arg5: memref<1x128xf32, #tpu.memory_space<vmem>>, %arg6: memref<4x128xf32, #tpu.memory_space<vmem>>) attributes {dimension_semantics = [#tpu.dimension_semantics<parallel>], iteration_bounds = array<i64: 1>, scalar_prefetch = 0 : i64, scratch_operands = 0 : i64, tpu.core_type = #tpu.core_type<tc>, window_params = [{transform_indices = @transform_0, window_bounds = array<i64: 8, 128>}, {pipeline_mode = #tpu.pipeline_mode<synchronous>, transform_indices = @transform_1, window_bounds = array<i64: 128, 8>}, {pipeline_mode = #tpu.pipeline_mode<synchronous>, transform_indices = @transform_2, window_bounds = array<i64: 2, 128>}, {pipeline_mode = #tpu.pipeline_mode<synchronous>, transform_indices = @transform_3, window_bounds = array<i64: 2, 1>}, {transform_indices = @transform_4, window_bounds = array<i64: 1, 128>}, {transform_indices = @transform_5, window_bounds = array<i64: 4, 128>}]} {
    %c0 = arith.constant 0 : index
    %c0_0 = arith.constant 0 : index
    %0 = vector.load %arg2[%c0, %c0_0] : memref<128x8xf32, #tpu.memory_space<vmem>>, vector<128x8xf32>
    %c0_1 = arith.constant 0 : index
    %c0_2 = arith.constant 0 : index
    %1 = vector.load %arg1[%c0_1, %c0_2] : memref<8x128xf32, #tpu.memory_space<vmem>>, vector<8x128xf32>
    %cst = arith.constant dense<0.000000e+00> : vector<128x128xf32>
    %2 = tpu.matmul %0, %1, %cst {dimension_numbers = #tpu.dot_dimension_numbers<[1], [0], [0], [1], [0, 0, 1, 1], [], []>} : vector<128x8xf32>, vector<8x128xf32>, vector<128x128xf32> -> vector<128x128xf32>
    %cst_3 = arith.constant 0.000000e+00 : f32
    %3 = vector.broadcast %cst_3 : f32 to vector<128x128xf32>
    %4 = arith.maximumf %2, %3 : vector<128x128xf32>
    %c0_4 = arith.constant 0 : index
    %c0_5 = arith.constant 0 : index
    %5 = vector.load %arg3[%c0_4, %c0_5] : memref<2x128xf32, #tpu.memory_space<vmem>>, vector<2x128xf32>
    %cst_6 = arith.constant dense<0.000000e+00> : vector<2x128xf32>
    %6 = tpu.matmul %5, %4, %cst_6 {dimension_numbers = #tpu.dot_dimension_numbers<[1], [0], [0], [1], [0, 0, 1, 1], [], []>} : vector<2x128xf32>, vector<128x128xf32>, vector<2x128xf32> -> vector<2x128xf32>
    %c0_7 = arith.constant 0 : index
    %c0_8 = arith.constant 0 : index
    %7 = vector.load %arg4[%c0_7, %c0_8] : memref<2x1xf32, #tpu.memory_space<vmem>>, vector<2x1xf32>
    %8 = vector.broadcast %7 : vector<2x1xf32> to vector<2x128xf32>
    %9 = arith.addf %6, %8 : vector<2x128xf32>
    %10 = vector.extract_strided_slice %9 {offsets = [0, 0], sizes = [1, 128], strides = [1, 1]} : vector<2x128xf32> to vector<1x128xf32>
    %11 = vector.extract_strided_slice %9 {offsets = [1, 0], sizes = [1, 128], strides = [1, 1]} : vector<2x128xf32> to vector<1x128xf32>
    %cst_9 = arith.constant 0.000000e+00 : f32
    %12 = vector.broadcast %cst_9 : f32 to vector<1x128xf32>
    %13 = arith.maximumf %10, %12 : vector<1x128xf32>
    %14 = math.absf %10 : vector<1x128xf32>
    %cst_10 = arith.constant 0.000000e+00 : f32
    %15 = vector.broadcast %cst_10 : f32 to vector<1x128xf32>
    %16 = arith.subf %15, %14 : vector<1x128xf32>
    %17 = math.exp %16 : vector<1x128xf32>
    %18 = math.log1p %17 : vector<1x128xf32>
    %19 = arith.addf %13, %18 : vector<1x128xf32>
    %20 = arith.subf %10, %19 : vector<1x128xf32>
    %21 = math.exp %20 : vector<1x128xf32>
    %22 = arith.mulf %21, %10 : vector<1x128xf32>
    %23 = arith.subf %19, %22 : vector<1x128xf32>
    %c0_11 = arith.constant 0 : index
    %c0_12 = arith.constant 0 : index
    %24 = vector.load %arg5[%c0_11, %c0_12] : memref<1x128xf32, #tpu.memory_space<vmem>>, vector<1x128xf32>
    %25 = arith.cmpf olt, %24, %21 : vector<1x128xf32>
    %26 = arith.extui %25 : vector<1x128xi1> to vector<1x128xi32>
    %27 = arith.sitofp %26 : vector<1x128xi32> to vector<1x128xf32>
    %28 = arith.mulf %27, %10 : vector<1x128xf32>
    %29 = arith.subf %28, %19 : vector<1x128xf32>
    %c0_13 = arith.constant 0 : index
    %c0_14 = arith.constant 0 : index
    %30 = vector.load %arg6[%c0_13, %c0_14] : memref<4x128xf32, #tpu.memory_space<vmem>>, vector<1x128xf32>
    tpu.vector_store %arg6[%c0_13, %c0_14], %27 {strides = array<i32>} : memref<4x128xf32, #tpu.memory_space<vmem>>, vector<1x128xf32>,
    %c1 = arith.constant 1 : index
    %c0_15 = arith.constant 0 : index
    %31 = vector.load %arg6[%c1, %c0_15] : memref<4x128xf32, #tpu.memory_space<vmem>>, vector<1x128xf32>
    tpu.vector_store %arg6[%c1, %c0_15], %29 {strides = array<i32>} : memref<4x128xf32, #tpu.memory_space<vmem>>, vector<1x128xf32>,
    %c2 = arith.constant 2 : index
    %c0_16 = arith.constant 0 : index
    %32 = vector.load %arg6[%c2, %c0_16] : memref<4x128xf32, #tpu.memory_space<vmem>>, vector<1x128xf32>
    tpu.vector_store %arg6[%c2, %c0_16], %23 {strides = array<i32>} : memref<4x128xf32, #tpu.memory_space<vmem>>, vector<1x128xf32>,
    %c3 = arith.constant 3 : index
    %c0_17 = arith.constant 0 : index
    %33 = vector.load %arg6[%c3, %c0_17] : memref<4x128xf32, #tpu.memory_space<vmem>>, vector<1x128xf32>
    tpu.vector_store %arg6[%c3, %c0_17], %11 {strides = array<i32>} : memref<4x128xf32, #tpu.memory_space<vmem>>, vector<1x128xf32>,
    return
  }
  func.func @transform_0(%arg0: i32) -> (i32, i32) {
    %c0_i32 = arith.constant 0 : i32
    %c0_i32_0 = arith.constant 0 : i32
    return %c0_i32, %arg0 : i32, i32
  }
  func.func @transform_1(%arg0: i32) -> (i32, i32) {
    %c0_i32 = arith.constant 0 : i32
    %c0_i32_0 = arith.constant 0 : i32
    %c0_i32_1 = arith.constant 0 : i32
    return %c0_i32, %c0_i32_0 : i32, i32
  }
  func.func @transform_2(%arg0: i32) -> (i32, i32) {
    %c0_i32 = arith.constant 0 : i32
    %c0_i32_0 = arith.constant 0 : i32
    %c0_i32_1 = arith.constant 0 : i32
    return %c0_i32, %c0_i32_0 : i32, i32
  }
  func.func @transform_3(%arg0: i32) -> (i32, i32) {
    %c0_i32 = arith.constant 0 : i32
    %c0_i32_0 = arith.constant 0 : i32
    %c0_i32_1 = arith.constant 0 : i32
    return %c0_i32, %c0_i32_0 : i32, i32
  }
  func.func @transform_4(%arg0: i32) -> (i32, i32) {
    %c0_i32 = arith.constant 0 : i32
    %c0_i32_0 = arith.constant 0 : i32
    return %c0_i32, %arg0 : i32, i32
  }
  func.func @transform_5(%arg0: i32) -> (i32, i32) {
    %c0_i32 = arith.constant 0 : i32
    %c0_i32_0 = arith.constant 0 : i32
    return %c0_i32, %arg0 : i32, i32
  }
}

</mosaic_0001>

<bundles_post_ra>
// kernel: tpu_custom_call.1
= control target key start
LH: loop header
LB: loop body
LE: loop exit
PB: predicated region body
PF: predicated region fallthrough
CT: control target
= control target key end

     0   :  { %vm38_vm0 = vcmask 64512   ;;  %s408_s0 = inlined_call_operand.vmem [shape: f32[8,128], index: 0, kind: input, shape index: {}]   ;;  %s409_s1 = inlined_call_operand.vmem [shape: f32[128,8], index: 1, kind: input, shape index: {}]   ;;  %s410_s2 = inlined_call_operand.vmem [shape: f32[2,128], index: 2, kind: input, shape index: {}]   ;;  %s411_s3 = inlined_call_operand.vmem [shape: f32[2,1], index: 3, kind: input, shape index: {}]   ;;  %s412_s4 = inlined_call_operand.vmem [shape: f32[1,128], index: 4, kind: input, shape index: {}]   ;;  %s413_s5 = inlined_call_operand.hbm [shape: f32[4,128], index: 5, kind: output, shape index: {}]  }
   0x1   :  { %v37_v0 = vld [vmem:[%s408_s0] sm:$0xff]  ;;  %v27_v1 = vld [vmem:[%s409_s1 + $0x30] sm:$0xff] }
   0x2   :  { %v33_v2 = vld [vmem:[%s409_s1 + $0x60] sm:$0xff]  ;;  %258 = vmatpush.msra.mxu2 %v37_v0  ;;  %259 = vmatpush.msra.mxu3 %v37_v0 }
   0x3   :  { %247 = vmatmul.msk.f32.vlgmr.msra.gmra.mxu2 %vm38_vm0, %v27_v1  ;;  %253 = vmatmul.msk.f32.vlgmr.msra.gmra.mxu3 %vm38_vm0, %v33_v2  ;;  %v21_v3 = vld [vmem:[%s409_s1] sm:$0xff] }
   0x4   :  { %102 = vmatpush.msra.mxu0 %v37_v0 }
   0x5   :  { %241 = vmatmul.msk.f32.vlgmr.msra.gmra.mxu0 %vm38_vm0, %v21_v3 }
   0x6   :  { %10 = vsyncpa [#allocation3], 0  ;;  %v28_v4 = vld [vmem:[%s409_s1 + $0x38] sm:$0xff]  ;;  %v34_v5 = vld [vmem:[%s409_s1 + $0x68] sm:$0xff]  ;;  %v296_v35 = vmov 0   ;;  %s298_s28 = smov [#allocation2]  }
   0x7   :  { %v22_v6 = vld [vmem:[%s409_s1 + $0x8] sm:$0xff]  ;;  %v29_v7 = vld [vmem:[%s409_s1 + $0x40] sm:$0xff]  ;;  %v35_v8 = vld [vmem:[%s409_s1 + $0x70] sm:$0xff]  ;;  %263 = vset.pattern.permute.xlu0 %v296_v35  ;;  %s230_s29 = sshll.u32 %s298_s28, 4  ;;  %s232_s7 = sshll.u32 %s413_s5, 4  ;;  %s231_s29 = int_to_ptr.vmem [resolvable:$true] %s230_s29  ;;  %s233_s7 = int_to_ptr.hbm [resolvable:$true] %s232_s7 }
   0x8   :  { %v23_v9 = vld [vmem:[%s409_s1 + $0x10] sm:$0xff]  ;;  %v30_v10 = vld [vmem:[%s409_s1 + $0x48] sm:$0xff]  ;;  %v36_v11 = vld [vmem:[%s409_s1 + $0x78] sm:$0xff] }
   0x9   :  { %v24_v12 = vld [vmem:[%s409_s1 + $0x18] sm:$0xff]  ;;  %v31_v13 = vld [vmem:[%s409_s1 + $0x50] sm:$0xff]  ;;  %v25_v14 = vld [vmem:[%s409_s1 + $0x20] sm:$0xff] }
   0xa   :  { %v32_v15 = vld [vmem:[%s409_s1 + $0x58] sm:$0xff]  ;;  %v26_v16 = vld [vmem:[%s409_s1 + $0x28] sm:$0xff]  ;;  %v169_v34 = vld [vmem:[%s411_s3] sm:$0x3] }
   0xb   :  { %248 = vmatmul.msk.f32.gmra.mxu2 %vm38_vm0, %v28_v4  ;;  %254 = vmatmul.msk.f32.gmra.mxu3 %vm38_vm0, %v34_v5  ;;  %v168_v51 = vld [vmem:[%s410_s2] sm:$0x3] }
   0xc   :  { %172 = vperm.xlu0 %263, %v169_v34  }
   0xd   :  { %242 = vmatmul.msk.f32.gmra.mxu0 %vm38_vm0, %v22_v6 }
  0x13   :  { %249 = vmatmul.msk.f32.gmra.mxu2 %vm38_vm0, %v29_v7  ;;  %255 = vmatmul.msk.f32.gmra.mxu3 %vm38_vm0, %v35_v8  ;;  %v215_v7 = vld [vmem:[%s412_s4] sm:$0x1] }
  0x15   :  { %243 = vmatmul.msk.f32.gmra.mxu0 %vm38_vm0, %v23_v9 }
  0x1b   :  { %250 = vmatmul.msk.f32.gmra.mxu2 %vm38_vm0, %v30_v10  ;;  %256 = vmatmul.msk.f32.gmra.mxu3 %vm38_vm0, %v36_v11  ;;  %v297_v10 = vmov 0.0  }
  0x1d   :  { %244 = vmatmul.msk.f32.gmra.mxu0 %vm38_vm0, %v24_v12 }
  0x23   :  { %251 = vmatmul.msk.f32.gmra.mxu2 %vm38_vm0, %v31_v13 }
  0x25   :  { %245 = vmatmul.msk.f32.gmra.mxu0 %vm38_vm0, %v25_v14 }
  0x2b   :  { %252 = vmatmul.msk.f32.gmra.mxu2 %vm38_vm0, %v32_v15 }
  0x2d   :  { %246 = vmatmul.msk.f32.gmra.mxu0 %vm38_vm0, %v26_v16 }
  0x7e   :  { %v173_v52 = vpop.permute.xlu0 %172 }
  0x82   :  { %v104_v17 = vpop.f32.mrf.mxu0 }
  0x83   :  { %v152_v50 = vmax.f32 %v104_v17, 0.0 }
  0x86   :  { %v122_v18 = vpop.f32.mrf.mxu2  ;;  %v140_v19 = vpop.f32.mrf.mxu3 }
  0x87   :  { %v164_v32 = vmax.f32 %v140_v19, 0.0  ;;  %v158_v44 = vmax.f32 %v122_v18, 0.0 }
  0x8a   :  { %v107_v20 = vpop.f32.mrf.mxu0 }
  0x8b   :  { %v153_v49 = vmax.f32 %v107_v20, 0.0 }
  0x8e   :  { %v125_v21 = vpop.f32.mrf.mxu2  ;;  %v143_v22 = vpop.f32.mrf.mxu3 }
  0x8f   :  { %v165_v31 = vmax.f32 %v143_v22, 0.0  ;;  %v159_v43 = vmax.f32 %v125_v21, 0.0 }
  0x92   :  { %v110_v25 = vpop.f32.mrf.mxu0 }
  0x93   :  { %v154_v48 = vmax.f32 %v110_v25, 0.0 }
  0x96   :  { %v128_v23 = vpop.f32.mrf.mxu2  ;;  %v146_v24 = vpop.f32.mrf.mxu3 }
  0x97   :  { %v166_v29 = vmax.f32 %v146_v24, 0.0  ;;  %v160_v41 = vmax.f32 %v128_v23, 0.0 }
  0x9a   :  { %v113_v30 = vpop.f32.mrf.mxu0 }
  0x9b   :  { %v155_v47 = vmax.f32 %v113_v30, 0.0 }
  0x9e   :  { %v131_v26 = vpop.f32.mrf.mxu2  ;;  %v149_v27 = vpop.f32.mrf.mxu3 }
  0x9f   :  { %v167_v28 = vmax.f32 %v149_v27, 0.0  ;;  %v161_v40 = vmax.f32 %v131_v26, 0.0 }
  0xa1   :  { %175 = vmatpush.msra.mxu1 %v167_v28 }
  0xa2   :  { %v116_v36 = vpop.f32.mrf.mxu0 }
  0xa3   :  { %176 = vmatpush.msra.mxu1 %v166_v29  ;;  %v156_v46 = vmax.f32 %v116_v36, 0.0 }
  0xa5   :  { %177 = vmatpush.msra.mxu1 %v165_v31 }
  0xa6   :  { %v134_v33 = vpop.f32.mrf.mxu2 }
  0xa7   :  { %178 = vmatpush.msra.mxu1 %v164_v32  ;;  %v162_v39 = vmax.f32 %v134_v33, 0.0 }
  0xaa   :  { %v119_v42 = vpop.f32.mrf.mxu0 }
  0xab   :  { %v157_v45 = vmax.f32 %v119_v42, 0.0 }
  0xae   :  { %v137_v37 = vpop.f32.mrf.mxu2 }
  0xaf   :  { %v163_v38 = vmax.f32 %v137_v37, 0.0 }
  0xb1   :  { %179 = vmatpush.msra.mxu1 %v163_v38 }
  0xb3   :  { %180 = vmatpush.msra.mxu1 %v162_v39 }
  0xb5   :  { %181 = vmatpush.msra.mxu1 %v161_v40 }
  0xb7   :  { %182 = vmatpush.msra.mxu1 %v160_v41 }
  0xb9   :  { %183 = vmatpush.msra.mxu1 %v159_v43 }
  0xbb   :  { %184 = vmatpush.msra.mxu1 %v158_v44 }
  0xbd   :  { %185 = vmatpush.msra.mxu1 %v157_v45 }
  0xbf   :  { %186 = vmatpush.msra.mxu1 %v156_v46 }
  0xc1   :  { %187 = vmatpush.msra.mxu1 %v155_v47 }
  0xc3   :  { %188 = vmatpush.msra.mxu1 %v154_v48 }
  0xc5   :  { %189 = vmatpush.msra.mxu1 %v153_v49 }
  0xc7   :  { %190 = vmatpush.msra.mxu1 %v152_v50 }
  0xc8   :  { %191 = vmatmul.f32.vlgmr.msra.gmra.mxu1 %v168_v51 }
 0x145   :  { %v192_v53 = vpop.f32.mrf.mxu1 }
 0x146   :  { %v193_v54 = vadd.f32 %v192_v53, %v173_v52 }
 0x148   :  { %v196_v55 = vand.u32 2147483647, %v193_v54  ;;  %224 = vst [vmem:[#allocation2 + $0x2] sm:$0x2] %v193_v54  ;;  %v195_v2 = vmax.f32 %v193_v54, 0.0 }
 0x14a   :  { %v197_v56 = vsub.f32 0.0, %v196_v55 }
 0x14c   :  { %v198_v57 = vmul.f32 1.442695, %v197_v56 }
 0x14e   :  { %264 = vpow2.f32 %v198_v57 }
 0x154   :  { %v265_v58 = vpop.eup %264 }
 0x155   :  { %v200_v59 = vadd.f32 1.0, %v265_v58  ;;  %v203_v60 = vmul.f32 -0.5, %v265_v58  ;;  %v206_v62 = vand.u32 2147483647, %v265_v58 }
 0x157   :  { %266 = vlog2.f32 %v200_v59  ;;  %v204_v61 = vadd.f32 1.0, %v203_v60  ;;  %vm207_vm1 = vcmp.lt.f32.partialorder %v206_v62, 0.0004427343 }
 0x159   :  { %v205_v1 = vmul.f32 %v265_v58, %v204_v61 }
 0x15d   :  { %v267_v63 = vpop.eup %266 }
 0x15e   :  { %v202_v0 = vmul.f32 0.6931472, %v267_v63 }
 0x160   :  { %v208_v3 = vsel %vm207_vm1, %v205_v1, %v202_v0 }
 0x161   :  { %v209_v4 = vadd.f32 %v208_v3, %v195_v2 }
 0x163   :  { %v210_v5 = vsub.f32 %v193_v54, %v209_v4 }
 0x165   :  { %v211_v6 = vmul.f32 1.442695, %v210_v5 }
 0x167   :  { %268 = vpow2.f32 %v211_v6 }
 0x16d   :  { %v269_v8 = vpop.eup %268 }
 0x16e   :  { %v213_v9 = vmul.f32 %v269_v8, %v193_v54  ;;  %vm216_vm2 = vcmp.lt.f32.partialorder %v215_v7, %v269_v8 }
 0x16f   :  { %v257_v11 = vsel %vm216_vm2, 1.0, %v297_v10 }
 0x170   :  { %v214_v12 = vsub.f32 %v209_v4, %v213_v9  ;;  %v219_v13 = vmul.f32 %v257_v11, %v193_v54  ;;  %221 = vst [vmem:[#allocation2] sm:$0x1] %v257_v11 }
 0x172   :  { %v220_v14 = vsub.f32 %v219_v13, %v209_v4  ;;  %223 = vst [vmem:[#allocation2 + $0x2] sm:$0x1] %v214_v12 }
 0x174   :  { %222 = vst [vmem:[#allocation2 + $0x1] sm:$0x1] %v220_v14 }
 0x175   :  { %235 = dma.vmem_to_hbm [thread:$0]  %s231_s29, 64, %s233_s7, [#allocation3]  }
 0x176   :  { %294 = dma.done.wait [#allocation3], 64  }
 0x177   :  { %295 = vsyncadd [#allocation3], 4294967232 }
 0x178   :  { %240 = vsyncpa [#allocation3], 1 }

</bundles_post_ra>
